<compile_context>
chip_gen: v5e
topology: v5e:2x2
jax: 0.10.0
libtpu: 0.0.40
codegen_flags: <defaults>
</compile_context>

<pallas_src>
import functools

import jax
import jax.numpy as jnp
from jax.experimental import pallas as pl
from jax.experimental.pallas import tpu as pltpu

_LANE = 128      # lane width: feature dims padded to multiples of this
_SUBLANE = 8     # f32 sublane width: batch padded to multiples of this


def _round_up(x, m):
    return ((x + m - 1) // m) * m


# ---------------------------------------------------------------------------
# Fused kernel: the whole MLP stack in one body.
# ---------------------------------------------------------------------------
def _fused_deep_kernel(x_ref, *refs):
    """refs = (w_0, shift_0, w_1, shift_1, ..., out_ref).

    Each layer: h = relu(h @ W'_l + shift_l), with the BN scale already folded
    into W'_l and bias/mean/beta folded into shift_l. Static Python loop over
    layers -> fully unrolled, activations stay resident on-chip.
    """
    o_ref = refs[-1]
    layer_refs = refs[:-1]
    n_layers = len(layer_refs) // 2

    h = x_ref[...]
    for l in range(n_layers):
        w = layer_refs[2 * l][...]
        shift = layer_refs[2 * l + 1][...]
        h = jnp.dot(h, w, preferred_element_type=jnp.float32) + shift
        h = jnp.maximum(h, 0.0)          # ReLU; zero-padded lanes stay 0.
    o_ref[...] = h.astype(o_ref.dtype)
    # TODO(synk): training-mode dropout would need pltpu.prng_seed /
    # pltpu.prng_random_bits masking here; eval mode => identity.


# ---------------------------------------------------------------------------
# One-time parameter preprocessing: fold BN, pad to lane-dense shapes.
# ---------------------------------------------------------------------------
def prepare_fused_params(params, eps=1e-5):
    prepped = []
    for p in params:
        in_dim, out_dim = p["w"].shape
        scale = p["gamma"] * jax.lax.rsqrt(p["running_var"] + eps)
        shift = (p["b"] - p["running_mean"]) * scale + p["beta"]
        w_fold = p["w"] * scale[None, :]          # fold BN scale into columns

        in_pad = _round_up(in_dim, _LANE)
        out_pad = _round_up(out_dim, _LANE)
        w_p = jnp.zeros((in_pad, out_pad), jnp.float32)
        w_p = w_p.at[:in_dim, :out_dim].set(w_fold.astype(jnp.float32))
        s_p = jnp.zeros((1, out_pad), jnp.float32)
        s_p = s_p.at[:, :out_dim].set(shift.astype(jnp.float32))
        prepped.append((w_p, s_p))
    return prepped


# ---------------------------------------------------------------------------
# Forward wrapper: pad the batch, run the single fused kernel, slice result.
# ---------------------------------------------------------------------------
def deep_network_forward(prepped, x, out_dim):
    B, in_dim = x.shape
    B_pad = _round_up(B, _SUBLANE)
    in_pad = prepped[0][0].shape[0]
    out_pad = prepped[-1][0].shape[1]

    x_pad = jnp.zeros((B_pad, in_pad), jnp.float32)
    x_pad = x_pad.at[:B, :in_dim].set(x.astype(jnp.float32))

    flat = [a for pair in prepped for a in pair]

    flops = 2 * B_pad * sum(w.shape[0] * w.shape[1] for w, _ in prepped)
    bytes_accessed = 4 * (x_pad.size
                          + sum(w.size + s.size for w, s in prepped)
                          + B_pad * out_pad)

    vmem = pl.BlockSpec(memory_space=pltpu.MemorySpace.VMEM)
    out_pad_arr = pl.pallas_call(
        _fused_deep_kernel,
        out_shape=jax.ShapeDtypeStruct((B_pad, out_pad), jnp.float32),
        in_specs=[vmem] * (1 + len(flat)),
        out_specs=vmem,
        cost_estimate=pl.CostEstimate(flops=flops,
                                      transcendentals=0,
                                      bytes_accessed=bytes_accessed),
    )(x_pad, *flat)
    # NOTE: at real sizes (hidden >= 1024, batch >= 1024) this whole-array,
    # no-grid design should be replaced with a gridded BlockSpec matmul
    # (grid=(M//tm, N//tn, K//tk), f32 VMEM accumulator, per-generation tiles).
    return out_pad_arr[:B, :out_dim]


# ---------------------------------------------------------------------------
# Synthetic parameters mimicking the PyTorch module + pure-JAX reference.
# ---------------------------------------------------------------------------
def init_deep_network_params(key, input_dim, hidden_layers):
    params = []
    prev_dim = input_dim
    for hidden_dim in hidden_layers:
        key, kw, kb, kg, kbe, km, kv = jax.random.split(key, 7)
        bound = 1.0 / jnp.sqrt(prev_dim)
        w = jax.random.uniform(kw, (prev_dim, hidden_dim),
                               minval=-bound, maxval=bound, dtype=jnp.float32)
        b = jax.random.uniform(kb, (hidden_dim,),
                               minval=-bound, maxval=bound, dtype=jnp.float32)
        gamma = 1.0 + 0.1 * jax.random.normal(kg, (hidden_dim,), jnp.float32)
        beta = 0.1 * jax.random.normal(kbe, (hidden_dim,), jnp.float32)
        running_mean = 0.1 * jax.random.normal(km, (hidden_dim,), jnp.float32)
        running_var = jnp.abs(
            1.0 + 0.1 * jax.random.normal(kv, (hidden_dim,), jnp.float32))
        params.append(dict(w=w, b=b, gamma=gamma, beta=beta,
                           running_mean=running_mean,
                           running_var=running_var))
        prev_dim = hidden_dim
    return params


def deep_network_reference(params, x, eps=1e-5):
    for p in params:
        y = x @ p["w"] + p["b"]
        y = (y - p["running_mean"]) / jnp.sqrt(p["running_var"] + eps)
        y = y * p["gamma"] + p["beta"]
        x = jnp.maximum(y, 0.0)
    return x


if __name__ == "__main__":
    key = jax.random.PRNGKey(0)
    batch = 8
    input_dim = 32
    hidden_layers = [64, 32]

    kx, kp = jax.random.split(key)
    x = jax.random.normal(kx, (batch, input_dim), dtype=jnp.float32)
    params = init_deep_network_params(kp, input_dim, hidden_layers)

    prepped = prepare_fused_params(params)             # one-time prep
    out = deep_network_forward(prepped, x, hidden_layers[-1])
    out = jax.block_until_ready(out)

    ref = deep_network_reference(params, x)
    assert out.shape == (batch, hidden_layers[-1])
    assert jnp.allclose(out, ref, atol=1e-5, rtol=1e-5), "mismatch vs reference"

    print("KERNEL_OK")
</pallas_src>

<mosaic_0001>
module attributes {stable_mosaic.version = 11 : i64} {
  func.func @_fused_deep_kernel(%arg0: memref<8x128xf32, #tpu.memory_space<vmem>>, %arg1: memref<128x128xf32, #tpu.memory_space<vmem>>, %arg2: memref<1x128xf32, #tpu.memory_space<vmem>>, %arg3: memref<128x128xf32, #tpu.memory_space<vmem>>, %arg4: memref<1x128xf32, #tpu.memory_space<vmem>>, %arg5: memref<8x128xf32, #tpu.memory_space<vmem>>) attributes {dimension_semantics = [], scalar_prefetch = 0 : i64, scratch_operands = 0 : i64, tpu.core_type = #tpu.core_type<tc>} {
    %c0 = arith.constant 0 : index
    %c0_0 = arith.constant 0 : index
    %0 = vector.load %arg0[%c0, %c0_0] : memref<8x128xf32, #tpu.memory_space<vmem>>, vector<8x128xf32>
    %c0_1 = arith.constant 0 : index
    %c0_2 = arith.constant 0 : index
    %1 = vector.load %arg1[%c0_1, %c0_2] : memref<128x128xf32, #tpu.memory_space<vmem>>, vector<128x128xf32>
    %c0_3 = arith.constant 0 : index
    %c0_4 = arith.constant 0 : index
    %2 = vector.load %arg2[%c0_3, %c0_4] : memref<1x128xf32, #tpu.memory_space<vmem>>, vector<1x128xf32>
    %cst = arith.constant dense<0.000000e+00> : vector<8x128xf32>
    %3 = tpu.matmul %0, %1, %cst {dimension_numbers = #tpu.dot_dimension_numbers<[1], [0], [0], [1], [0, 0, 1, 1], [], []>} : vector<8x128xf32>, vector<128x128xf32>, vector<8x128xf32> -> vector<8x128xf32>
    %4 = vector.broadcast %2 : vector<1x128xf32> to vector<8x128xf32>
    %5 = arith.addf %3, %4 : vector<8x128xf32>
    %cst_5 = arith.constant 0.000000e+00 : f32
    %6 = vector.broadcast %cst_5 : f32 to vector<8x128xf32>
    %7 = arith.maximumf %5, %6 : vector<8x128xf32>
    %c0_6 = arith.constant 0 : index
    %c0_7 = arith.constant 0 : index
    %8 = vector.load %arg3[%c0_6, %c0_7] : memref<128x128xf32, #tpu.memory_space<vmem>>, vector<128x128xf32>
    %c0_8 = arith.constant 0 : index
    %c0_9 = arith.constant 0 : index
    %9 = vector.load %arg4[%c0_8, %c0_9] : memref<1x128xf32, #tpu.memory_space<vmem>>, vector<1x128xf32>
    %cst_10 = arith.constant dense<0.000000e+00> : vector<8x128xf32>
    %10 = tpu.matmul %7, %8, %cst_10 {dimension_numbers = #tpu.dot_dimension_numbers<[1], [0], [0], [1], [0, 0, 1, 1], [], []>} : vector<8x128xf32>, vector<128x128xf32>, vector<8x128xf32> -> vector<8x128xf32>
    %11 = vector.broadcast %9 : vector<1x128xf32> to vector<8x128xf32>
    %12 = arith.addf %10, %11 : vector<8x128xf32>
    %cst_11 = arith.constant 0.000000e+00 : f32
    %13 = vector.broadcast %cst_11 : f32 to vector<8x128xf32>
    %14 = arith.maximumf %12, %13 : vector<8x128xf32>
    %c0_12 = arith.constant 0 : index
    %c0_13 = arith.constant 0 : index
    %15 = vector.load %arg5[%c0_12, %c0_13] : memref<8x128xf32, #tpu.memory_space<vmem>>, vector<8x128xf32>
    tpu.vector_store %arg5[%c0_12, %c0_13], %14 {strides = array<i32>} : memref<8x128xf32, #tpu.memory_space<vmem>>, vector<8x128xf32>,
    return
  }
}

</mosaic_0001>

<bundles_post_ra>
// kernel: tpu_custom_call.1
= control target key start
LH: loop header
LB: loop body
LE: loop exit
PB: predicated region body
PF: predicated region fallthrough
CT: control target
= control target key end

     0   :  { %10 = vsyncpa [#allocation3], 0  ;;  %s332_s0 = inlined_call_operand.hbm [shape: f32[8,128], index: 0, kind: input, shape index: {}]   ;;  %s333_s1 = inlined_call_operand.hbm [shape: f32[128,128], index: 1, kind: input, shape index: {}]   ;;  %s334_s2 = inlined_call_operand.vmem [shape: f32[1,128], index: 2, kind: input, shape index: {}]   ;;  %s335_s3 = inlined_call_operand.hbm [shape: f32[128,128], index: 3, kind: input, shape index: {}]   ;;  %s336_s4 = inlined_call_operand.vmem [shape: f32[1,128], index: 4, kind: input, shape index: {}]   ;;  %s337_s5 = inlined_call_operand.hbm [shape: f32[8,128], index: 5, kind: output, shape index: {}]  }
   0x1   :  { %11 = vsyncpa [#allocation6], 0  ;;  %s28_s20 = sshll.u32 %s333_s1, 4  ;;  %s29_s20 = int_to_ptr.hbm [resolvable:$true] %s28_s20 }
   0x2   :  { %12 = vsyncpa [#allocation4], 0  ;;  %s278_s21 = smov [#allocation5]   ;;  %s18_s25 = sshll.u32 %s332_s0, 4  ;;  %s19_s25 = int_to_ptr.hbm [resolvable:$true] %s18_s25 }
   0x3   :  { %s30_s22 = sshll.u32 %s278_s21, 4  ;;  %s279_s26 = smov 128   ;;  %s31_s22 = int_to_ptr.vmem [resolvable:$true] %s30_s22 }
   0x4   :  { %s280_s27 = smov 8   ;;  %s281_s28 = smov [#allocation2]  }
   0x5   :  { %36 = dma.hbm_to_vmem [thread:$0]  %s29_s20, 2048, %s31_s22, [#allocation6], %s279_s26, %s279_s26, %s280_s27  }
   0x6   :  { %s20_s29 = sshll.u32 %s281_s28, 4  ;;  %s43_s7 = sshll.u32 %s335_s3, 4  ;;  %s21_s29 = int_to_ptr.vmem [resolvable:$true] %s20_s29  ;;  %s44_s7 = int_to_ptr.hbm [resolvable:$true] %s43_s7 }
   0x7   :  { %23 = dma.hbm_to_vmem [thread:$0]  %s19_s25, 128, %s21_s29, [#allocation3]  }
   0x8   :  { %s282_s1 = smov [#allocation7]  }
   0x9   :  { %s45_s8 = sshll.u32 %s282_s1, 4  ;;  %s46_s8 = int_to_ptr.vmem [resolvable:$true] %s45_s8 }
   0xa   :  { %51 = dma.hbm_to_vmem [thread:$0]  %s44_s7, 2048, %s46_s8, [#allocation6], %s279_s26, %s279_s26, %s280_s27  }
   0xb   :  { %272 = dma.done.wait [#allocation3], 128  }
   0xc   :  { %273 = vsyncadd [#allocation3], 4294967168 }
   0xd   :  { %274 = dma.done.wait [#allocation6], 4096  }
   0xe   :  { %275 = vsyncadd [#allocation6], 4294963200  ;;  %v82_v0 = vld [vmem:[#allocation5 + $0x78] sm:$0xff]  ;;  %v81_v1 = vld [vmem:[#allocation5 + $0x70] sm:$0xff]  ;;  %s283_s11 = smov [#allocation8]   ;;  %s157_s15 = sshll.u32 %s337_s5, 4  ;;  %s158_s15 = int_to_ptr.hbm [resolvable:$true] %s157_s15 }
   0xf   :  { %87 = vmatpush.msra.mxu0 %v82_v0  ;;  %v80_v2 = vld [vmem:[#allocation5 + $0x68] sm:$0xff]  ;;  %v79_v3 = vld [vmem:[#allocation5 + $0x60] sm:$0xff]  ;;  %v123_v4 = vld [vmem:[#allocation7 + $0x78] sm:$0xff]  ;;  %s155_s12 = sshll.u32 %s283_s11, 4  ;;  %s156_s12 = int_to_ptr.vmem [resolvable:$true] %s155_s12 }
  0x10   :  { %v78_v5 = vld [vmem:[#allocation5 + $0x58] sm:$0xff]  ;;  %128 = vmatpush.msra.mxu1 %v123_v4  ;;  %v122_v6 = vld [vmem:[#allocation7 + $0x70] sm:$0xff]  ;;  %v121_v7 = vld [vmem:[#allocation7 + $0x68] sm:$0xff] }
  0x11   :  { %88 = vmatpush.msra.mxu0 %v81_v1  ;;  %v77_v8 = vld [vmem:[#allocation5 + $0x50] sm:$0xff]  ;;  %v120_v9 = vld [vmem:[#allocation7 + $0x60] sm:$0xff]  ;;  %v76_v10 = vld [vmem:[#allocation5 + $0x48] sm:$0xff] }
  0x12   :  { %129 = vmatpush.msra.mxu1 %v122_v6  ;;  %v119_v11 = vld [vmem:[#allocation7 + $0x58] sm:$0xff]  ;;  %v75_v12 = vld [vmem:[#allocation5 + $0x40] sm:$0xff]  ;;  %v118_v13 = vld [vmem:[#allocation7 + $0x50] sm:$0xff] }
  0x13   :  { %89 = vmatpush.msra.mxu0 %v80_v2  ;;  %v74_v14 = vld [vmem:[#allocation5 + $0x38] sm:$0xff]  ;;  %v117_v15 = vld [vmem:[#allocation7 + $0x48] sm:$0xff]  ;;  %v73_v16 = vld [vmem:[#allocation5 + $0x30] sm:$0xff] }
  0x14   :  { %130 = vmatpush.msra.mxu1 %v121_v7  ;;  %v116_v17 = vld [vmem:[#allocation7 + $0x40] sm:$0xff]  ;;  %v72_v18 = vld [vmem:[#allocation5 + $0x28] sm:$0xff]  ;;  %v115_v19 = vld [vmem:[#allocation7 + $0x38] sm:$0xff] }
  0x15   :  { %90 = vmatpush.msra.mxu0 %v79_v3  ;;  %v71_v20 = vld [vmem:[#allocation5 + $0x20] sm:$0xff]  ;;  %v114_v21 = vld [vmem:[#allocation7 + $0x30] sm:$0xff]  ;;  %v70_v22 = vld [vmem:[#allocation5 + $0x18] sm:$0xff] }
  0x16   :  { %131 = vmatpush.msra.mxu1 %v120_v9  ;;  %v113_v23 = vld [vmem:[#allocation7 + $0x28] sm:$0xff]  ;;  %v69_v24 = vld [vmem:[#allocation5 + $0x10] sm:$0xff]  ;;  %v112_v25 = vld [vmem:[#allocation7 + $0x20] sm:$0xff] }
  0x17   :  { %91 = vmatpush.msra.mxu0 %v78_v5  ;;  %v68_v26 = vld [vmem:[#allocation5 + $0x8] sm:$0xff]  ;;  %v111_v27 = vld [vmem:[#allocation7 + $0x18] sm:$0xff]  ;;  %v67_v28 = vld [vmem:[#allocation5] sm:$0xff] }
  0x18   :  { %132 = vmatpush.msra.mxu1 %v119_v11  ;;  %v66_v29 = vld [vmem:[#allocation2] sm:$0xff]  ;;  %v110_v30 = vld [vmem:[#allocation7 + $0x10] sm:$0xff]  ;;  %v109_v31 = vld [vmem:[#allocation7 + $0x8] sm:$0xff] }
  0x19   :  { %92 = vmatpush.msra.mxu0 %v77_v8  ;;  %v108_v32 = vld [vmem:[#allocation7] sm:$0xff]  ;;  %v174_v33 = vld [vmem:[%s334_s2] ss:$0 sm:$0xff] }
  0x1a   :  { %133 = vmatpush.msra.mxu1 %v118_v13  ;;  %v175_v37 = vld [vmem:[%s336_s4] ss:$0 sm:$0xff] }
  0x1b   :  { %93 = vmatpush.msra.mxu0 %v76_v10 }
  0x1c   :  { %134 = vmatpush.msra.mxu1 %v117_v15 }
  0x1d   :  { %94 = vmatpush.msra.mxu0 %v75_v12 }
  0x1e   :  { %135 = vmatpush.msra.mxu1 %v116_v17 }
  0x1f   :  { %95 = vmatpush.msra.mxu0 %v74_v14 }
  0x20   :  { %136 = vmatpush.msra.mxu1 %v115_v19 }
  0x21   :  { %96 = vmatpush.msra.mxu0 %v73_v16 }
  0x22   :  { %137 = vmatpush.msra.mxu1 %v114_v21 }
  0x23   :  { %97 = vmatpush.msra.mxu0 %v72_v18 }
  0x24   :  { %138 = vmatpush.msra.mxu1 %v113_v23 }
  0x25   :  { %98 = vmatpush.msra.mxu0 %v71_v20 }
  0x26   :  { %139 = vmatpush.msra.mxu1 %v112_v25 }
  0x27   :  { %99 = vmatpush.msra.mxu0 %v70_v22 }
  0x28   :  { %140 = vmatpush.msra.mxu1 %v111_v27 }
  0x29   :  { %100 = vmatpush.msra.mxu0 %v69_v24 }
  0x2a   :  { %141 = vmatpush.msra.mxu1 %v110_v30 }
  0x2b   :  { %101 = vmatpush.msra.mxu0 %v68_v26 }
  0x2c   :  { %142 = vmatpush.msra.mxu1 %v109_v31 }
  0x2d   :  { %102 = vmatpush.msra.mxu0 %v67_v28 }
  0x2e   :  { %103 = vmatmul.f32.vlgmr.msra.gmra.mxu0 %v66_v29  ;;  %143 = vmatpush.msra.mxu1 %v108_v32 }
  0xab   :  { %v104_v34 = vpop.f32.mrf.mxu0 }
  0xac   :  { %v105_v35 = vadd.f32 %v174_v33, %v104_v34 }
  0xae   :  { %v107_v36 = vmax.f32 %v105_v35, 0.0 }
  0xb0   :  { %144 = vmatmul.f32.vlgmr.msra.gmra.mxu1 %v107_v36 }
 0x12d   :  { %v145_v38 = vpop.f32.mrf.mxu1 }
 0x12e   :  { %v146_v39 = vadd.f32 %v175_v37, %v145_v38 }
 0x130   :  { %v148_v40 = vmax.f32 %v146_v39, 0.0 }
 0x132   :  { %149 = vst [vmem:[#allocation8] sm:$0xff] %v148_v40 }
 0x133   :  { %160 = dma.vmem_to_hbm [thread:$0]  %s156_s12, 128, %s158_s15, [#allocation4]  }
 0x134   :  { %276 = dma.done.wait [#allocation4], 128  }
 0x135   :  { %277 = vsyncadd [#allocation4], 4294967168 }
 0x136   :  { %165 = vsyncpa [#allocation3], 1 }
 0x137   :  { %166 = vsyncpa [#allocation6], 1 }
 0x138   :  { %167 = vsyncpa [#allocation4], 1 }

</bundles_post_ra>
